<compile_context>
chip_gen: v7x
topology: tpu7x:2x2x1
jax: 0.10.0
libtpu: 0.0.40
codegen_flags: <defaults>
</compile_context>

<pallas_src>
import jax
import jax.numpy as jnp
from jax.experimental import pallas as pl
from jax.experimental.pallas import tpu as pltpu


def _cosine_kernel(x_ref, w_ref, inv_x_ref, inv_w_ref, o_ref, acc_ref):
    """One (bm, bn) output tile, accumulated over the K (feature) grid axis."""
    k = pl.program_id(2)

    @pl.when(k == 0)
    def _():
        acc_ref[...] = jnp.zeros_like(acc_ref)

    # Raw inner products on the MXU: contract the feature axis of both
    # operands directly (no transposed copy of w), f32 accumulation.
    acc_ref[...] += jax.lax.dot_general(
        x_ref[...], w_ref[...],
        dimension_numbers=(((1,), (1,)), ((), ())),
        preferred_element_type=jnp.float32,
    )

    @pl.when(k == pl.num_programs(2) - 1)
    def _():
        # Fold both normalizations into the small output tile:
        # (bm, bn) * (bm, 1) * (1, bn)  — no transposes, no divides.
        o_ref[...] = (acc_ref[...] * inv_x_ref[...] * inv_w_ref[...]).astype(
            o_ref.dtype)


def _round_up(a: int, b: int) -> int:
    return ((a + b - 1) // b) * b


def _vmem_bytes(bm: int, bn: int, bk: int, in_itemsize: int) -> int:
    return (2 * (bm + bn) * bk * in_itemsize   # double-buffered x / w tiles
            + 2 * (bm + bn) * 4                # double-buffered inv_x / inv_w
            + 2 * bm * bn * 4                  # double-buffered output tile
            + bm * bn * 4)                     # f32 accumulator scratch


def cosine_classifier(x: jax.Array, weight: jax.Array, *,
                      bm_max: int = 256, bn_max: int = 256, bk_max: int = 2048,
                      use_bf16_matmul: bool = False) -> jax.Array:
    """x: (B, F), weight: (C, F)  ->  (B, C) cosine logits (float32)."""
    B, F = x.shape
    C, Fw = weight.shape
    assert F == Fw, "feature dims must match"
    assert bm_max % 8 == 0 and bn_max % 128 == 0 and bk_max % 128 == 0

    # --- precompute inverse row L2 norms once (cheap XLA ops) ---------------
    xf = x.astype(jnp.float32)
    wf = weight.astype(jnp.float32)
    inv_x = jax.lax.rsqrt(jnp.sum(xf * xf, axis=1, keepdims=True))      # (B, 1)
    inv_w = jax.lax.rsqrt(jnp.sum(wf * wf, axis=1, keepdims=True)).T    # (1, C)

    # --- matmul operand dtype (optional bf16, f32 accumulation) -------------
    x_in = x.astype(jnp.bfloat16) if use_bf16_matmul else x
    w_in = weight.astype(jnp.bfloat16) if use_bf16_matmul else weight
    in_itemsize = jnp.dtype(x_in.dtype).itemsize

    # --- tile sizes ----------------------------------------------------------
    # bm/bn: either the full (small) dim or an 8/128-aligned tile.
    # bk: the full F, or a 128-aligned K tile (F zero-padded if ragged).
    bm = B if B <= bm_max else bm_max
    bn = C if C <= bn_max else bn_max
    bk = F if F <= bk_max else bk_max
    # Keep the per-step VMEM footprint modest (v7x has only 64 MiB physical).
    while bk < F and bk > 128 and _vmem_bytes(bm, bn, bk, in_itemsize) > (24 << 20):
        bk //= 2

    f_pad = _round_up(F, bk)
    if f_pad != F:
        # Zero-padding the contracted axis is numerically exact.
        x_in = jnp.pad(x_in, ((0, 0), (0, f_pad - F)))
        w_in = jnp.pad(w_in, ((0, 0), (0, f_pad - F)))

    nb = pl.cdiv(B, bm)
    nc = pl.cdiv(C, bn)
    nk = f_pad // bk

    # --- grid order: larger-traffic operand on the outer (revisited) axis ----
    revisit_x = (nb * C) <= (nc * B)
    if revisit_x:
        grid = (nb, nc, nk)
        x_map  = lambda b, c, k: (b, k)
        w_map  = lambda b, c, k: (c, k)
        ix_map = lambda b, c, k: (b, 0)
        iw_map = lambda b, c, k: (0, c)
        o_map  = lambda b, c, k: (b, c)
    else:
        grid = (nc, nb, nk)
        x_map  = lambda c, b, k: (b, k)
        w_map  = lambda c, b, k: (c, k)
        ix_map = lambda c, b, k: (b, 0)
        iw_map = lambda c, b, k: (0, c)
        o_map  = lambda c, b, k: (b, c)

    vmem_need = _vmem_bytes(bm, bn, bk, in_itemsize)
    vmem_limit = int(min(56 << 20, max(32 << 20, 2 * vmem_need)))

    cost = pl.CostEstimate(
        flops=2 * B * C * F,
        transcendentals=0,
        bytes_accessed=(B * F + C * F) * in_itemsize + B * C * 4 + (B + C) * 4,
    )

    return pl.pallas_call(
        _cosine_kernel,
        out_shape=jax.ShapeDtypeStruct((B, C), jnp.float32),
        grid=grid,
        in_specs=[
            pl.BlockSpec((bm, bk), x_map),
            pl.BlockSpec((bn, bk), w_map),
            pl.BlockSpec((bm, 1), ix_map),
            pl.BlockSpec((1, bn), iw_map),
        ],
        out_specs=pl.BlockSpec((bm, bn), o_map),
        scratch_shapes=[pltpu.VMEM((bm, bn), jnp.float32)],
        compiler_params=pltpu.CompilerParams(
            dimension_semantics=("parallel", "parallel", "arbitrary"),
            vmem_limit_bytes=vmem_limit,
        ),
        cost_estimate=cost,
    )(x_in, w_in, inv_x, inv_w)


def _reference(x, weight):
    x_n = x / jnp.linalg.norm(x, axis=1, keepdims=True)
    w_n = weight / jnp.linalg.norm(weight, axis=1, keepdims=True)
    return x_n @ w_n.T


if __name__ == "__main__":
    key = jax.random.PRNGKey(0)

    # --- 1) module-consistent micro config (single grid step, full-dim blocks)
    features_size, n_classes, batch = 32, 16, 8
    kx, kw, kx2, kw2 = jax.random.split(key, 4)

    x = jax.random.normal(kx, (batch, features_size), dtype=jnp.float32)
    # Deterministic synthetic init for nn.Linear(features_size, n_classes,
    # bias=False): weight shape (n_classes, features_size), kaiming-like bound.
    bound = 1.0 / (features_size ** 0.5)
    weight = jax.random.uniform(
        kw, (n_classes, features_size), minval=-bound, maxval=bound,
        dtype=jnp.float32)

    out = jax.block_until_ready(cosine_classifier(x, weight))
    ref = _reference(x, weight)
    assert out.shape == (batch, n_classes)
    assert jnp.allclose(out, ref, atol=1e-5, rtol=1e-5), (
        f"small-case max err {jnp.max(jnp.abs(out - ref))}")

    # --- 2) multi-block config exercising partial edges + K-tiled accumulator
    B2, C2, F2 = 272, 384, 2176           # ragged vs bm=256 / bn=256 / bk=512
    x2 = jax.random.normal(kx2, (B2, F2), dtype=jnp.float32)
    w2 = jax.random.normal(kw2, (C2, F2), dtype=jnp.float32) * 0.05

    out2 = jax.block_until_ready(cosine_classifier(x2, w2, bk_max=512))
    ref2 = _reference(x2, w2)
    assert out2.shape == (B2, C2)
    assert jnp.allclose(out2, ref2, atol=1e-5, rtol=1e-5), (
        f"tiled-case max err {jnp.max(jnp.abs(out2 - ref2))}")

    print("KERNEL_OK")
</pallas_src>

<mosaic_0001>
module attributes {stable_mosaic.version = 11 : i64} {
  func.func @_cosine_kernel(%arg0: i32, %arg1: i32, %arg2: i32, %arg3: memref<8x32xf32, #tpu.memory_space<vmem>>, %arg4: memref<16x32xf32, #tpu.memory_space<vmem>>, %arg5: memref<8x1xf32, #tpu.memory_space<vmem>>, %arg6: memref<1x16xf32, #tpu.memory_space<vmem>>, %arg7: memref<8x16xf32, #tpu.memory_space<vmem>>, %arg8: memref<8x16xf32, #tpu.memory_space<vmem>>) attributes {dimension_semantics = [#tpu.dimension_semantics<parallel>, #tpu.dimension_semantics<parallel>, #tpu.dimension_semantics<arbitrary>], iteration_bounds = array<i64: 1, 1, 1>, scalar_prefetch = 0 : i64, scratch_operands = 1 : i64, tpu.core_type = #tpu.core_type<tc>, window_params = [{transform_indices = @transform_0, window_bounds = array<i64: 8, 32>}, {transform_indices = @transform_1, window_bounds = array<i64: 16, 32>}, {transform_indices = @transform_2, window_bounds = array<i64: 8, 1>}, {transform_indices = @transform_3, window_bounds = array<i64: 1, 16>}, {transform_indices = @transform_4, window_bounds = array<i64: 8, 16>}]} {
    %c0_i32 = arith.constant 0 : i32
    %0 = arith.cmpi eq, %arg2, %c0_i32 : i32
    %1 = arith.extui %0 : i1 to i32
    %c0_i32_0 = arith.constant 0 : i32
    %2 = arith.cmpi ne, %1, %c0_i32_0 : i32
    scf.if %2 {
      %cst_10 = arith.constant 0.000000e+00 : f32
      %12 = vector.broadcast %cst_10 : f32 to vector<8x16xf32>
      %c0_11 = arith.constant 0 : index
      %c0_12 = arith.constant 0 : index
      %13 = vector.load %arg8[%c0_11, %c0_12] : memref<8x16xf32, #tpu.memory_space<vmem>>, vector<8x16xf32>
      tpu.vector_store %arg8[%c0_11, %c0_12], %12 {strides = array<i32>} : memref<8x16xf32, #tpu.memory_space<vmem>>, vector<8x16xf32>,
    } else {
    }
    %c0 = arith.constant 0 : index
    %c0_1 = arith.constant 0 : index
    %3 = vector.load %arg8[%c0, %c0_1] : memref<8x16xf32, #tpu.memory_space<vmem>>, vector<8x16xf32>
    %c0_2 = arith.constant 0 : index
    %c0_3 = arith.constant 0 : index
    %4 = vector.load %arg3[%c0_2, %c0_3] : memref<8x32xf32, #tpu.memory_space<vmem>>, vector<8x32xf32>
    %c0_4 = arith.constant 0 : index
    %c0_5 = arith.constant 0 : index
    %5 = vector.load %arg4[%c0_4, %c0_5] : memref<16x32xf32, #tpu.memory_space<vmem>>, vector<16x32xf32>
    %cst = arith.constant dense<0.000000e+00> : vector<8x16xf32>
    %6 = tpu.matmul %4, %5, %cst {dimension_numbers = #tpu.dot_dimension_numbers<[1], [1], [0], [0], [0, 0, 1, 0], [], []>} : vector<8x32xf32>, vector<16x32xf32>, vector<8x16xf32> -> vector<8x16xf32>
    %7 = arith.addf %3, %6 : vector<8x16xf32>
    %c0_6 = arith.constant 0 : index
    %c0_7 = arith.constant 0 : index
    %8 = vector.load %arg8[%c0_6, %c0_7] : memref<8x16xf32, #tpu.memory_space<vmem>>, vector<8x16xf32>
    tpu.vector_store %arg8[%c0_6, %c0_7], %7 {strides = array<i32>} : memref<8x16xf32, #tpu.memory_space<vmem>>, vector<8x16xf32>,
    %c0_i32_8 = arith.constant 0 : i32
    %9 = arith.cmpi eq, %arg2, %c0_i32_8 : i32
    %10 = arith.extui %9 : i1 to i32
    %c0_i32_9 = arith.constant 0 : i32
    %11 = arith.cmpi ne, %10, %c0_i32_9 : i32
    scf.if %11 {
      %c0_10 = arith.constant 0 : index
      %c0_11 = arith.constant 0 : index
      %12 = vector.load %arg8[%c0_10, %c0_11] : memref<8x16xf32, #tpu.memory_space<vmem>>, vector<8x16xf32>
      %c0_12 = arith.constant 0 : index
      %c0_13 = arith.constant 0 : index
      %13 = vector.load %arg5[%c0_12, %c0_13] : memref<8x1xf32, #tpu.memory_space<vmem>>, vector<8x1xf32>
      %14 = vector.broadcast %13 : vector<8x1xf32> to vector<8x16xf32>
      %15 = arith.mulf %12, %14 : vector<8x16xf32>
      %c0_14 = arith.constant 0 : index
      %c0_15 = arith.constant 0 : index
      %16 = vector.load %arg6[%c0_14, %c0_15] : memref<1x16xf32, #tpu.memory_space<vmem>>, vector<1x16xf32>
      %17 = vector.broadcast %16 : vector<1x16xf32> to vector<8x16xf32>
      %18 = arith.mulf %15, %17 : vector<8x16xf32>
      %c0_16 = arith.constant 0 : index
      %c0_17 = arith.constant 0 : index
      %19 = vector.load %arg7[%c0_16, %c0_17] : memref<8x16xf32, #tpu.memory_space<vmem>>, vector<8x16xf32>
      tpu.vector_store %arg7[%c0_16, %c0_17], %18 {strides = array<i32>} : memref<8x16xf32, #tpu.memory_space<vmem>>, vector<8x16xf32>,
    } else {
    }
    return
  }
  func.func @transform_0(%arg0: i32, %arg1: i32, %arg2: i32) -> (i32, i32) {
    %c0_i32 = arith.constant 0 : i32
    return %arg1, %arg2 : i32, i32
  }
  func.func @transform_1(%arg0: i32, %arg1: i32, %arg2: i32) -> (i32, i32) {
    %c0_i32 = arith.constant 0 : i32
    return %arg0, %arg2 : i32, i32
  }
  func.func @transform_2(%arg0: i32, %arg1: i32, %arg2: i32) -> (i32, i32) {
    %c0_i32 = arith.constant 0 : i32
    %c0_i32_0 = arith.constant 0 : i32
    return %arg1, %c0_i32 : i32, i32
  }
  func.func @transform_3(%arg0: i32, %arg1: i32, %arg2: i32) -> (i32, i32) {
    %c0_i32 = arith.constant 0 : i32
    %c0_i32_0 = arith.constant 0 : i32
    return %c0_i32, %arg0 : i32, i32
  }
  func.func @transform_4(%arg0: i32, %arg1: i32, %arg2: i32) -> (i32, i32) {
    %c0_i32 = arith.constant 0 : i32
    return %arg1, %arg0 : i32, i32
  }
}

</mosaic_0001>

<bundles_post_ra>
// kernel: tpu_custom_call.1
= control target key start
LH: loop header
LB: loop body
LE: loop exit
PB: predicated region body
PF: predicated region fallthrough
CT: control target
= control target key end

     0   :  { %9 = vsyncpa [#allocation4], 0  ;;  %s304_s0 = inlined_call_operand.vmem [shape: f32[8,32], index: 0, kind: input, shape index: {}]   ;;  %s305_s1 = inlined_call_operand.hbm [shape: f32[16,32], index: 1, kind: input, shape index: {}]   ;;  %s306_s2 = inlined_call_operand.vmem [shape: f32[8,1], index: 2, kind: input, shape index: {}]   ;;  %s307_s3 = inlined_call_operand.vmem [shape: f32[1,16], index: 3, kind: input, shape index: {}]   ;;  %s308_s4 = inlined_call_operand.hbm [shape: f32[8,16], index: 4, kind: output, shape index: {}]  }
   0x1   :  { %10 = vsyncpa [#allocation5], 0  ;;  %s235_s15 = smov [#allocation3]   ;;  %s187_s19 = scalar_lea.hbm %s305_s1, 256 }
   0x2   :  { %s18_s16 = sshll.u32 %s235_s15, 4  ;;  %p188_p0 = scmp.ne.s32.totalorder %s305_s1, %s187_s19  ;;  %s19_s16 = int_to_ptr.vmem [resolvable:$true] %s18_s16 }
   0x3   :  { %p191_p1 = scmp.lt.u32.totalorder %s187_s19, %s305_s1 }
   0x5   :  { %p193_p2 = pnand %p191_p1, %p188_p0 }
   0x7   :  { %196 = shalt.err (!%p193_p2)
}
   0x8   :  { %s197_s24 = scalar_lea.vmem %s19_s16, 256  ;;  %p202_p4 = scmp.lt.s32.totalorder %s19_s16, %s19_s16 }
   0x9   :  { %p198_p3 = scmp.ne.s32.totalorder %s19_s16, %s197_s24  ;;  %p203_p5 = scmp.lt.s32.totalorder %s197_s24, %s197_s24 }
   0xb   :  { %p204_p6 = por %p203_p5, %p202_p4 }
   0xd   :  { %p205_p7 = pnand %p204_p6, %p198_p3 }
   0xf   :  { %208 = shalt.err (!%p205_p7)
}
  0x10   :  { %s236_s25 = smov 128   ;;  %s237_s26 = smov 8  }
  0x11   :  { %24 = dma.hbm_to_vmem [thread:$0]  %s305_s1, 256, %s19_s16, [#allocation4], %s236_s25, %s236_s25, %s237_s26  }
  0x12   :  { %231 = dma.done.wait [#allocation4], 256  }
  0x13   :  { %232 = vsyncadd [#allocation4], 4294967040  ;;  %vm36_vm0 = vcmask 130048   ;;  %v238_v0 = vmov 0.0|0.0   ;;  %v239_v1 = vmov 0.0   ;;  %vm240_vm1 = vmmov 0  }
  0x14   :  { %174 = vmatprep.subr.bf16.mxu0 %v238_v0  ;;  %37 = vst.msk [vmem:[#allocation2] sm:$0xff] %vm36_vm0, %v239_v1  ;;  %171 = vmatprep.mubr.msk.f32.mxu0 %vm240_vm1, %v239_v1  ;;  %v241_v2 = vmov 0   ;;  %vm42_vm2 = vcmask 261120   ;;  %v40_v3 = vld [vmem:[#allocation3] sm:$0xff]  ;;  %v41_v4 = vld [vmem:[#allocation3 + $0x8] sm:$0xff]  ;;  %v129_v6 = vld [vmem:[%s306_s2] sm:$0xff] }
  0x15   :  { %186 = vset.pattern.permute.xlu0 %v241_v2  ;;  %vm176_vm3 = vmpackc.low %vm42_vm2, %vm42_vm2  ;;  %v175_v5 = vpack.c.bf16 %v41_v4, %v40_v3  ;;  %v39_v7 = vld [vmem:[%s304_s0] sm:$0xff]  ;;  %s242_s2 = smov [#allocation6]  }
  0x16   :  { %132 = vperm.xlu0 %186, %v129_v6   ;;  %v163_v13 = vld [vmem:[%s307_s3] ss:$0 sm:$0xff]  ;;  %s151_s8 = sshll.u32 %s242_s2, 4  ;;  %s152_s8 = int_to_ptr.vmem [resolvable:$true] %s151_s8 }
  0x17   :  { %177 = vmatpush3.bf16.xpose.msk.msra.mxu0 %vm176_vm3, %v175_v5  ;;  %s209_s0 = scalar_lea.vmem %s152_s8, 128  ;;  %p214_p9 = scmp.lt.s32.totalorder %s152_s8, %s152_s8 }
  0x18   :  { %p210_p8 = scmp.ne.s32.totalorder %s152_s8, %s209_s0  ;;  %p215_p10 = scmp.lt.s32.totalorder %s209_s0, %s209_s0 }
  0x1a   :  { %p216_p11 = por %p215_p10, %p214_p9 }
  0x1b   :  { %v38_v8 = vld [vmem:[#allocation2] sm:$0xff] }
  0x1c   :  { %p217_p12 = pnand %p216_p11, %p210_p8 }
  0x1e   :  { %172 = vmatmul.mubr.msk.f32.vlgmr.msra.gmra.mrb[0].mxu0 %vm42_vm2, %v39_v7 }
  0x95   :  { %v133_v12 = vpop.permute.xlu0 %132 }
  0xf1   :  { %v118_v9 = vpop.f32.mrb[0].mxu0 }
  0xf2   :  { %v122_v10 = vadd.f32 %v118_v9, %v38_v8  ;;  %v173_v11 = vpop.f32.mrb[1].mxu0 }
  0xf4   :  { %124 = vst.msk [vmem:[#allocation2] sm:$0xff] %vm36_vm0, %v122_v10 }
  0xfb   :  { %v128_v14 = vld [vmem:[#allocation2] sm:$0xff] }
  0xfc   :  { %v135_v15 = vmul.f32 %v133_v12, %v128_v14 }
  0xfe   :  { %v143_v16 = vmul.f32 %v163_v13, %v135_v15 }
 0x100   :  { %144 = vst.msk [vmem:[#allocation6] sm:$0xff] %vm36_vm0, %v143_v16 }
 0x101   :  { %220 = shalt.err (!%p217_p12)
}
 0x102   :  { %s221_s11 = scalar_lea.hbm %s308_s4, 128 }
 0x103   :  { %p222_p13 = scmp.ne.s32.totalorder %s308_s4, %s221_s11  ;;  %p225_p0 = scmp.lt.u32.totalorder %s221_s11, %s308_s4 }
 0x105   :  { %p227_p1 = pnand %p225_p0, %p222_p13 }
 0x107   :  { %230 = shalt.err (!%p227_p1)
}
 0x108   :  { %154 = dma.vmem_to_hbm [thread:$0]  %s152_s8, 128, %s308_s4, [#allocation5]  }
 0x109   :  { %233 = dma.done.wait [#allocation5], 128  }
 0x10a   :  { %234 = vsyncadd [#allocation5], 4294967168 }
 0x10b   :  { %158 = vsyncpa [#allocation4], 1 }
 0x10c   :  { %159 = vsyncpa [#allocation5], 1 }

</bundles_post_ra>
